<compile_context>
chip_gen: v7x
topology: tpu7x:2x2x1
jax: 0.10.0
libtpu: 0.0.40
codegen_flags: <defaults>
</compile_context>

<pallas_src>
import functools

import jax
import jax.numpy as jnp
from jax.experimental import pallas as pl
from jax.experimental.pallas import tpu as pltpu


# ----------------------------- activations --------------------------------- #
def _apply_activation(y, act):
    """In-kernel activation math (f32). Matches models.modules.get_activation."""
    if act in (None, "linear"):
        return y
    if act == "relu":
        return jnp.maximum(y, 0.0)
    if act == "sigmoid":
        return jax.nn.sigmoid(y)
    if act == "softplus":
        return jax.nn.softplus(y)
    if act == "tanh":
        return jnp.tanh(y)
    if act == "leakyrelu":
        # Project's get_activation uses nn.LeakyReLU(0.2) (not the 0.01 default).
        return jnp.where(y >= 0.0, y, 0.2 * y)
    if act == "softmax":
        # nn.Softmax(dim=1) on a [B, D] tensor == softmax over the feature axis.
        # The feature axis is never tiled, so this per-row softmax is exact.
        m = jnp.max(y, axis=-1, keepdims=True)
        e = jnp.exp(y - m)
        return e * pl.reciprocal(jnp.sum(e, axis=-1, keepdims=True), approx=True)
    if act == "selu":
        alpha = 1.6732632423543772848170429916717
        scale = 1.0507009873554804934193349852946
        return scale * jnp.where(y > 0.0, y, alpha * (jnp.exp(y) - 1.0))
    if act == "elu":
        return jnp.where(y > 0.0, y, jnp.exp(y) - 1.0)
    raise ValueError(f"Unexpected activation: {act}")


def _ref_activation(y, act):
    """Host/reference-side activation (no Pallas primitives)."""
    if act == "softmax":
        return jax.nn.softmax(y, axis=-1)
    return _apply_activation(y, act)


# ------------------------------- fused kernel ------------------------------- #
def _fused_mlp_kernel(*refs, acts, mm_dtype):
    """refs = (x_ref, w0, b0, w1, b1, ..., o_ref). All layers fused in VMEM."""
    n_layers = len(acts)
    x_ref = refs[0]
    o_ref = refs[1 + 2 * n_layers]

    h = x_ref[...]
    for li in range(n_layers):
        w = refs[1 + 2 * li][...]
        b = refs[2 + 2 * li][...]
        # Feed the MXU at the parameter/compute dtype; accumulate in f32.
        y = jnp.dot(h.astype(mm_dtype), w, preferred_element_type=jnp.float32)
        y = y + b.astype(jnp.float32)
        h = _apply_activation(y, acts[li])          # stays in VMEM / vregs (f32)
    o_ref[...] = h.astype(o_ref.dtype)


def _pick_batch_tile(batch_padded):
    """Largest power-of-two batch tile (>=8 sublanes) that divides padded B."""
    for tm in (512, 256, 128, 64, 32, 16, 8):
        if batch_padded % tm == 0:
            return tm
    return batch_padded  # can't happen once batch is padded to a multiple of 8


def fused_mlp_forward(x, params, *, acts):
    """x: [B, Din0] (or [B, ...] -> flattened); params: tuple of (W[Din,Dout], b[1,Dout])."""
    if x.ndim > 2:
        x = x.reshape(x.shape[0], -1)
    batch, din0 = x.shape
    dout_last = params[-1][0].shape[1]
    param_dtype = params[0][0].dtype

    # Pad the batch to a multiple of 8 sublanes so every block is layout-friendly.
    pad = (-batch) % 8
    xb = jnp.pad(x, ((0, pad), (0, 0))) if pad else x
    batch_p = batch + pad

    tm = _pick_batch_tile(batch_p)
    nb = batch_p // tm

    # Block specs: x/out tiled over batch; each weight/bias is one resident block
    # (same block index for every grid step -> DMA'd once, reused across steps).
    in_specs = [pl.BlockSpec((tm, din0), lambda i: (i, 0))]
    flat_params = []
    for (w, b) in params:
        din, dout = w.shape
        in_specs.append(pl.BlockSpec((din, dout), lambda i: (0, 0)))
        in_specs.append(pl.BlockSpec((1, dout), lambda i: (0, 0)))
        flat_params += [w, b]
    out_spec = pl.BlockSpec((tm, dout_last), lambda i: (i, 0))

    # Cost estimate + VMEM budget (double-buffered x/out tiles + resident params).
    flops = 0
    transcendentals = 0
    param_bytes = 0
    widest = max(din0, dout_last)
    for (w, b), act in zip(params, acts):
        din, dout = w.shape
        flops += 2 * batch_p * din * dout
        if act in ("sigmoid", "softplus", "tanh", "softmax", "selu", "elu"):
            transcendentals += batch_p * dout
        param_bytes += w.size * w.dtype.itemsize + b.size * b.dtype.itemsize
        widest = max(widest, dout)
    bytes_accessed = (xb.size * xb.dtype.itemsize + param_bytes
                      + batch_p * dout_last * x.dtype.itemsize)
    est = (param_bytes
           + 2 * (tm * din0 + tm * dout_last) * x.dtype.itemsize  # double-buffered I/O
           + 4 * tm * widest * 4)                                 # f32 intermediates
    # Cap below the v7x per-TC VMEM (64 MiB) with headroom.
    vmem_limit = int(min(48 * 1024 * 1024, max(32 * 1024 * 1024, 4 * est)))

    kernel = functools.partial(_fused_mlp_kernel, acts=tuple(acts),
                               mm_dtype=param_dtype)
    out = pl.pallas_call(
        kernel,
        out_shape=jax.ShapeDtypeStruct((batch_p, dout_last), x.dtype),
        grid_spec=pltpu.PrefetchScalarGridSpec(
            num_scalar_prefetch=0,
            grid=(nb,),
            in_specs=in_specs,
            out_specs=out_spec,
        ),
        compiler_params=pltpu.CompilerParams(
            dimension_semantics=("parallel",),   # batch tiles shardable across TCs
            vmem_limit_bytes=vmem_limit,
        ),
        cost_estimate=pl.CostEstimate(
            flops=flops,
            transcendentals=transcendentals,
            bytes_accessed=bytes_accessed,
        ),
    )(xb, *flat_params)
    return out[:batch] if pad else out


# ------------------------------ FC_vec model -------------------------------- #
class FCVecPallas:
    """JAX/Pallas port of FC_vec (stack of Linear layers + activations), fused."""

    def __init__(self, in_chan=2, out_chan=1, l_hidden=None,
                 activation=None, out_activation=None, key=None,
                 dtype=jnp.float32):
        l_hidden = list(l_hidden)
        activation = list(activation)
        l_neurons = l_hidden + [out_chan]
        if len(activation) > len(l_hidden):
            activation = activation[: len(l_hidden)]
        elif len(activation) < len(l_hidden):
            while len(activation) < len(l_hidden):
                activation.append(activation[-1])
        activation = activation + [out_activation]
        self.acts = tuple(activation)

        params = []
        prev_dim = in_chan
        key = key if key is not None else jax.random.PRNGKey(0)
        for n_hidden in l_neurons:
            key, kw, kb = jax.random.split(key, 3)
            # Deterministic init mimicking nn.Linear's uniform(-1/sqrt(fan_in), ...)
            bound = 1.0 / (prev_dim ** 0.5)
            w = jax.random.uniform(kw, (prev_dim, n_hidden), dtype,
                                   minval=-bound, maxval=bound)
            b = jax.random.uniform(kb, (1, n_hidden), dtype,
                                   minval=-bound, maxval=bound)
            params.append((w, b))
            prev_dim = n_hidden
        self.params = tuple(params)

        # jit once: single fused pallas_call per forward, no per-layer dispatch.
        self._forward = jax.jit(functools.partial(fused_mlp_forward, acts=self.acts))

    def __call__(self, x):
        return self._forward(x, self.params)


# ------------------------------ reference ----------------------------------- #
def _ref_forward(model, x):
    if x.ndim > 2:
        x = x.reshape(x.shape[0], -1)
    h = x.astype(jnp.float32)
    for (w, b), act in zip(model.params, model.acts):
        h = jnp.dot(h, w.astype(jnp.float32),
                    preferred_element_type=jnp.float32) + b.astype(jnp.float32)
        h = _ref_activation(h, act)
    return h


if __name__ == "__main__":
    key = jax.random.PRNGKey(0)
    k_x, k_p = jax.random.split(key)

    batch, in_chan, out_chan = 8, 32, 16
    l_hidden = [64, 64]
    activation = ["relu", "tanh"]
    out_activation = "linear"

    model = FCVecPallas(in_chan=in_chan, out_chan=out_chan, l_hidden=l_hidden,
                        activation=activation, out_activation=out_activation,
                        key=k_p)

    x = jax.random.normal(k_x, (batch, in_chan), jnp.float32)

    out = jax.block_until_ready(model(x))

    ref = _ref_forward(model, x)
    assert out.shape == (batch, out_chan), out.shape
    max_err = float(jnp.max(jnp.abs(out.astype(jnp.float32) - ref)))
    assert jnp.allclose(out.astype(jnp.float32), ref, atol=1e-5, rtol=1e-5), max_err

    print("KERNEL_OK")
</pallas_src>

<mosaic_0001>
module attributes {stable_mosaic.version = 11 : i64} {
  func.func @_fused_mlp_kernel(%arg0: i32, %arg1: memref<8x32xf32, #tpu.memory_space<vmem>>, %arg2: memref<32x64xf32, #tpu.memory_space<vmem>>, %arg3: memref<1x64xf32, #tpu.memory_space<vmem>>, %arg4: memref<64x64xf32, #tpu.memory_space<vmem>>, %arg5: memref<1x64xf32, #tpu.memory_space<vmem>>, %arg6: memref<64x16xf32, #tpu.memory_space<vmem>>, %arg7: memref<1x16xf32, #tpu.memory_space<vmem>>, %arg8: memref<8x16xf32, #tpu.memory_space<vmem>>) attributes {dimension_semantics = [#tpu.dimension_semantics<parallel>], iteration_bounds = array<i64: 1>, scalar_prefetch = 0 : i64, scratch_operands = 0 : i64, tpu.core_type = #tpu.core_type<tc>, window_params = [{transform_indices = @transform_0, window_bounds = array<i64: 8, 32>}, {pipeline_mode = #tpu.pipeline_mode<synchronous>, transform_indices = @transform_1, window_bounds = array<i64: 32, 64>}, {pipeline_mode = #tpu.pipeline_mode<synchronous>, transform_indices = @transform_2, window_bounds = array<i64: 1, 64>}, {pipeline_mode = #tpu.pipeline_mode<synchronous>, transform_indices = @transform_3, window_bounds = array<i64: 64, 64>}, {pipeline_mode = #tpu.pipeline_mode<synchronous>, transform_indices = @transform_4, window_bounds = array<i64: 1, 64>}, {pipeline_mode = #tpu.pipeline_mode<synchronous>, transform_indices = @transform_5, window_bounds = array<i64: 64, 16>}, {pipeline_mode = #tpu.pipeline_mode<synchronous>, transform_indices = @transform_6, window_bounds = array<i64: 1, 16>}, {transform_indices = @transform_7, window_bounds = array<i64: 8, 16>}]} {
    %c0 = arith.constant 0 : index
    %c0_0 = arith.constant 0 : index
    %0 = vector.load %arg1[%c0, %c0_0] : memref<8x32xf32, #tpu.memory_space<vmem>>, vector<8x32xf32>
    %c0_1 = arith.constant 0 : index
    %c0_2 = arith.constant 0 : index
    %1 = vector.load %arg2[%c0_1, %c0_2] : memref<32x64xf32, #tpu.memory_space<vmem>>, vector<32x64xf32>
    %c0_3 = arith.constant 0 : index
    %c0_4 = arith.constant 0 : index
    %2 = vector.load %arg3[%c0_3, %c0_4] : memref<1x64xf32, #tpu.memory_space<vmem>>, vector<1x64xf32>
    %cst = arith.constant dense<0.000000e+00> : vector<8x64xf32>
    %3 = tpu.matmul %0, %1, %cst {dimension_numbers = #tpu.dot_dimension_numbers<[1], [0], [0], [1], [0, 0, 1, 1], [], []>} : vector<8x32xf32>, vector<32x64xf32>, vector<8x64xf32> -> vector<8x64xf32>
    %4 = vector.broadcast %2 : vector<1x64xf32> to vector<8x64xf32>
    %5 = arith.addf %3, %4 : vector<8x64xf32>
    %cst_5 = arith.constant 0.000000e+00 : f32
    %6 = vector.broadcast %cst_5 : f32 to vector<8x64xf32>
    %7 = arith.maximumf %5, %6 : vector<8x64xf32>
    %c0_6 = arith.constant 0 : index
    %c0_7 = arith.constant 0 : index
    %8 = vector.load %arg4[%c0_6, %c0_7] : memref<64x64xf32, #tpu.memory_space<vmem>>, vector<64x64xf32>
    %c0_8 = arith.constant 0 : index
    %c0_9 = arith.constant 0 : index
    %9 = vector.load %arg5[%c0_8, %c0_9] : memref<1x64xf32, #tpu.memory_space<vmem>>, vector<1x64xf32>
    %cst_10 = arith.constant dense<0.000000e+00> : vector<8x64xf32>
    %10 = tpu.matmul %7, %8, %cst_10 {dimension_numbers = #tpu.dot_dimension_numbers<[1], [0], [0], [1], [0, 0, 1, 1], [], []>} : vector<8x64xf32>, vector<64x64xf32>, vector<8x64xf32> -> vector<8x64xf32>
    %11 = vector.broadcast %9 : vector<1x64xf32> to vector<8x64xf32>
    %12 = arith.addf %10, %11 : vector<8x64xf32>
    %13 = math.tanh %12 : vector<8x64xf32>
    %c0_11 = arith.constant 0 : index
    %c0_12 = arith.constant 0 : index
    %14 = vector.load %arg6[%c0_11, %c0_12] : memref<64x16xf32, #tpu.memory_space<vmem>>, vector<64x16xf32>
    %c0_13 = arith.constant 0 : index
    %c0_14 = arith.constant 0 : index
    %15 = vector.load %arg7[%c0_13, %c0_14] : memref<1x16xf32, #tpu.memory_space<vmem>>, vector<1x16xf32>
    %cst_15 = arith.constant dense<0.000000e+00> : vector<8x16xf32>
    %16 = tpu.matmul %13, %14, %cst_15 {dimension_numbers = #tpu.dot_dimension_numbers<[1], [0], [0], [1], [0, 0, 1, 1], [], []>} : vector<8x64xf32>, vector<64x16xf32>, vector<8x16xf32> -> vector<8x16xf32>
    %17 = vector.broadcast %15 : vector<1x16xf32> to vector<8x16xf32>
    %18 = arith.addf %16, %17 : vector<8x16xf32>
    %c0_16 = arith.constant 0 : index
    %c0_17 = arith.constant 0 : index
    %19 = vector.load %arg8[%c0_16, %c0_17] : memref<8x16xf32, #tpu.memory_space<vmem>>, vector<8x16xf32>
    tpu.vector_store %arg8[%c0_16, %c0_17], %18 {strides = array<i32>} : memref<8x16xf32, #tpu.memory_space<vmem>>, vector<8x16xf32>,
    return
  }
  func.func @transform_0(%arg0: i32) -> (i32, i32) {
    %c0_i32 = arith.constant 0 : i32
    %c0_i32_0 = arith.constant 0 : i32
    return %arg0, %c0_i32 : i32, i32
  }
  func.func @transform_1(%arg0: i32) -> (i32, i32) {
    %c0_i32 = arith.constant 0 : i32
    %c0_i32_0 = arith.constant 0 : i32
    %c0_i32_1 = arith.constant 0 : i32
    return %c0_i32, %c0_i32_0 : i32, i32
  }
  func.func @transform_2(%arg0: i32) -> (i32, i32) {
    %c0_i32 = arith.constant 0 : i32
    %c0_i32_0 = arith.constant 0 : i32
    %c0_i32_1 = arith.constant 0 : i32
    return %c0_i32, %c0_i32_0 : i32, i32
  }
  func.func @transform_3(%arg0: i32) -> (i32, i32) {
    %c0_i32 = arith.constant 0 : i32
    %c0_i32_0 = arith.constant 0 : i32
    %c0_i32_1 = arith.constant 0 : i32
    return %c0_i32, %c0_i32_0 : i32, i32
  }
  func.func @transform_4(%arg0: i32) -> (i32, i32) {
    %c0_i32 = arith.constant 0 : i32
    %c0_i32_0 = arith.constant 0 : i32
    %c0_i32_1 = arith.constant 0 : i32
    return %c0_i32, %c0_i32_0 : i32, i32
  }
  func.func @transform_5(%arg0: i32) -> (i32, i32) {
    %c0_i32 = arith.constant 0 : i32
    %c0_i32_0 = arith.constant 0 : i32
    %c0_i32_1 = arith.constant 0 : i32
    return %c0_i32, %c0_i32_0 : i32, i32
  }
  func.func @transform_6(%arg0: i32) -> (i32, i32) {
    %c0_i32 = arith.constant 0 : i32
    %c0_i32_0 = arith.constant 0 : i32
    %c0_i32_1 = arith.constant 0 : i32
    return %c0_i32, %c0_i32_0 : i32, i32
  }
  func.func @transform_7(%arg0: i32) -> (i32, i32) {
    %c0_i32 = arith.constant 0 : i32
    %c0_i32_0 = arith.constant 0 : i32
    return %arg0, %c0_i32 : i32, i32
  }
}

</mosaic_0001>

<bundles_post_ra>
// kernel: fused_mlp_forward.1
= control target key start
LH: loop header
LB: loop body
LE: loop exit
PB: predicated region body
PF: predicated region fallthrough
CT: control target
= control target key end

     0   :  { %12 = vsyncpa [#allocation3], 0  ;;  %s634_s0 = inlined_call_operand.vmem [shape: f32[8,32], index: 0, kind: input, shape index: {}]   ;;  %s635_s1 = inlined_call_operand.hbm [shape: f32[32,64], index: 1, kind: input, shape index: {}]   ;;  %s636_s2 = inlined_call_operand.vmem [shape: f32[1,64], index: 2, kind: input, shape index: {}]   ;;  %s637_s3 = inlined_call_operand.vmem [shape: f32[64,64], index: 3, kind: input, shape index: {}]   ;;  %s638_s4 = inlined_call_operand.vmem [shape: f32[1,64], index: 4, kind: input, shape index: {}]   ;;  %s639_s5 = inlined_call_operand.vmem [shape: f32[64,16], index: 5, kind: input, shape index: {}]   ;;  %s640_s6 = inlined_call_operand.vmem [shape: f32[1,16], index: 6, kind: input, shape index: {}]   ;;  %s641_s7 = inlined_call_operand.hbm [shape: f32[8,16], index: 7, kind: output, shape index: {}]  }
   0x1   :  { %13 = vsyncpa [#allocation4], 0  ;;  %s488_s24 = smov [#allocation2]   ;;  %s440_s28 = scalar_lea.hbm %s635_s1, 512 }
   0x2   :  { %s21_s25 = sshll.u32 %s488_s24, 4  ;;  %p441_p0 = scmp.ne.s32.totalorder %s635_s1, %s440_s28  ;;  %s22_s25 = int_to_ptr.vmem [resolvable:$true] %s21_s25 }
   0x3   :  { %p444_p1 = scmp.lt.u32.totalorder %s440_s28, %s635_s1 }
   0x5   :  { %p446_p2 = pnand %p444_p1, %p441_p0 }
   0x7   :  { %449 = shalt.err (!%p446_p2)
}
   0x8   :  { %s450_s10 = scalar_lea.vmem %s22_s25, 512  ;;  %p455_p4 = scmp.lt.s32.totalorder %s22_s25, %s22_s25 }
   0x9   :  { %p451_p3 = scmp.ne.s32.totalorder %s22_s25, %s450_s10  ;;  %p456_p5 = scmp.lt.s32.totalorder %s450_s10, %s450_s10 }
   0xb   :  { %p457_p6 = por %p456_p5, %p455_p4 }
   0xd   :  { %p458_p7 = pnand %p457_p6, %p451_p3 }
   0xf   :  { %461 = shalt.err (!%p458_p7)
}
  0x10   :  { %s489_s11 = smov 128   ;;  %s490_s12 = smov 8  }
  0x11   :  { %27 = dma.hbm_to_vmem [thread:$0]  %s635_s1, 512, %s22_s25, [#allocation3], %s489_s11, %s489_s11, %s490_s12  }
  0x12   :  { %484 = dma.done.wait [#allocation3], 512  }
  0x13   :  { %485 = vsyncadd [#allocation3], 4294966784  ;;  %v491_v0 = vmov 0.0|0.0   ;;  %vm492_vm0 = vmmov 0   ;;  %v493_v1 = vmov 0.0   ;;  %v42_v2 = vld [vmem:[#allocation2] sm:$0xff] }
  0x14   :  { %401 = vmatprep.subr.bf16.mxu0 %v491_v0  ;;  %360 = vmatprep.mubr.msk.f32.mxu0 %vm492_vm0, %v493_v1  ;;  %v43_v3 = vld [vmem:[#allocation2 + $0x8] sm:$0xff]  ;;  %v44_v4 = vld [vmem:[#allocation2 + $0x10] sm:$0xff]  ;;  %v45_v6 = vld [vmem:[#allocation2 + $0x18] sm:$0xff]  ;;  %vm53_vm1 = vcmask 261120   ;;  %vm143_vm2 = vcmask 523264   ;;  %vm306_vm3 = vcmask 130048  }
  0x15   :  { %407 = vmatprep.subr.bf16.mxu1 %v491_v0  ;;  %379 = vmatprep.mubr.msk.f32.mxu1 %vm492_vm0, %v493_v1  ;;  %v402_v5 = vpack.c.bf16 %v43_v3, %v42_v2  ;;  %v128_v7 = vld [vmem:[%s637_s3] sm:$0xff]  ;;  %v129_v8 = vld [vmem:[%s637_s3 + $0x8] sm:$0xff]  ;;  %v130_v9 = vld [vmem:[%s637_s3 + $0x10] sm:$0xff]  ;;  %v405_v11 = vpack.c.bf16 %v45_v6, %v44_v4 }
  0x16   :  { %v131_v10 = vld [vmem:[%s637_s3 + $0x18] sm:$0xff]  ;;  %v408_v12 = vpack.c.bf16 %v129_v8, %v128_v7  ;;  %v132_v14 = vld [vmem:[%s637_s3 + $0x20] sm:$0xff]  ;;  %v133_v15 = vld [vmem:[%s637_s3 + $0x28] sm:$0xff] }
  0x17   :  { %403 = vmatpush3.bf16.msra.mxu0 %v402_v5  ;;  %v411_v13 = vpack.c.bf16 %v131_v10, %v130_v9  ;;  %v41_v16 = vld [vmem:[%s634_s0] sm:$0xff]  ;;  %v414_v17 = vpack.c.bf16 %v133_v15, %v132_v14  ;;  %v134_v18 = vld [vmem:[%s637_s3 + $0x30] sm:$0xff]  ;;  %v135_v19 = vld [vmem:[%s637_s3 + $0x38] sm:$0xff] }
  0x18   :  { %404 = vmatprep.subr.bf16.mxu0 %v491_v0  ;;  %409 = vmatpush3.bf16.msra.mxu1 %v408_v12  ;;  %v417_v20 = vpack.c.bf16 %v135_v19, %v134_v18  ;;  %v218_v21 = vld [vmem:[%s639_s5] sm:$0xff]  ;;  %v219_v22 = vld [vmem:[%s639_s5 + $0x8] sm:$0xff]  ;;  %v220_v29 = vld [vmem:[%s639_s5 + $0x10] sm:$0xff] }
  0x19   :  { %410 = vmatprep.subr.bf16.mxu1 %v491_v0  ;;  %v420_v23 = vpack.c.bf16 %v219_v22, %v218_v21  ;;  %v323_v24 = vld [vmem:[%s636_s2] ss:$0 sm:$0xff]  ;;  %v221_v30 = vld [vmem:[%s639_s5 + $0x18] sm:$0xff]  ;;  %v223_v33 = vld [vmem:[%s639_s5 + $0x28] sm:$0xff] }
  0x1a   :  { %v423_v31 = vpack.c.bf16 %v221_v30, %v220_v29  ;;  %v222_v32 = vld [vmem:[%s639_s5 + $0x20] sm:$0xff]  ;;  %v224_v35 = vld [vmem:[%s639_s5 + $0x30] sm:$0xff]  ;;  %v225_v36 = vld [vmem:[%s639_s5 + $0x38] sm:$0xff]  ;;  %s494_s5 = smov [#allocation5]  }
  0x1b   :  { %406 = vmatpush3.bf16.msra.mxu0 %v405_v11  ;;  %v426_v34 = vpack.c.bf16 %v223_v33, %v222_v32  ;;  %v429_v37 = vpack.c.bf16 %v225_v36, %v224_v35  ;;  %v325_v38 = vld [vmem:[%s638_s4] ss:$0 sm:$0xff]  ;;  %s314_s27 = sshll.u32 %s494_s5, 4  ;;  %s315_s27 = int_to_ptr.vmem [resolvable:$true] %s314_s27 }
  0x1c   :  { %419 = vmatprep.subr.bf16.mxu0 %v491_v0  ;;  %412 = vmatpush3.bf16.msra.mxu1 %v411_v13  ;;  %v327_v43 = vld [vmem:[%s640_s6] ss:$0 sm:$0xff]  ;;  %s462_s4 = scalar_lea.vmem %s315_s27, 128  ;;  %p467_p9 = scmp.lt.s32.totalorder %s315_s27, %s315_s27 }
  0x1d   :  { %413 = vmatprep.subr.bf16.mxu1 %v491_v0  ;;  %p463_p8 = scmp.ne.s32.totalorder %s315_s27, %s462_s4  ;;  %p468_p10 = scmp.lt.s32.totalorder %s462_s4, %s462_s4 }
  0x1e   :  { %361 = vmatmul.mubr.msk.f32.vlgmr.msra.gmra.mrb[0].mxu0 %vm53_vm1, %v41_v16 }
  0x1f   :  { %398 = vmatprep.mubr.msk.f32.mxu0 %vm492_vm0, %v493_v1  ;;  %421 = vmatpush3.bf16.msra.mxu0 %v420_v23  ;;  %p469_p11 = por %p468_p10, %p467_p9 }
  0x20   :  { %415 = vmatpush3.bf16.msra.mxu1 %v414_v17  ;;  %422 = vmatprep.subr.bf16.mxu0 %v491_v0 }
  0x21   :  { %416 = vmatprep.subr.bf16.mxu1 %v491_v0  ;;  %p470_p12 = pnand %p469_p11, %p463_p8 }
  0x23   :  { %424 = vmatpush3.bf16.msra.mxu0 %v423_v31 }
  0x24   :  { %418 = vmatpush3.bf16.msra.mxu1 %v417_v20  ;;  %425 = vmatprep.subr.bf16.mxu0 %v491_v0 }
  0x27   :  { %427 = vmatpush3.bf16.msra.mxu0 %v426_v34 }
  0x28   :  { %428 = vmatprep.subr.bf16.mxu0 %v491_v0 }
  0x2b   :  { %430 = vmatpush3.bf16.msra.mxu0 %v429_v37 }
  0xf1   :  { %v123_v25 = vpop.f32.mrb[0].mxu0 }
  0xf2   :  { %v124_v26 = vadd.f32 %v323_v24, %v123_v25  ;;  %v362_v27 = vpop.f32.mrb[1].mxu0 }
  0xf4   :  { %v127_v28 = vmax.f32 %v124_v26, 0.0 }
  0xf6   :  { %380 = vmatmul.mubr.msk.f32.vlgmr.msra.gmra.mrb[0].mxu1 %vm143_vm2, %v127_v28 }
 0x1c9   :  { %v213_v39 = vpop.f32.mrb[0].mxu1 }
 0x1ca   :  { %v214_v40 = vadd.f32 %v325_v38, %v213_v39  ;;  %v381_v41 = vpop.f32.mrb[1].mxu1 }
 0x1cc   :  { %438 = vtanh.f32 %v214_v40 }
 0x1d6   :  { %v439_v42 = vpop.eup %438 }
 0x1d7   :  { %399 = vmatmul.mubr.msk.f32.vlgmr.msra.gmra.mrb[2].mxu0 %vm143_vm2, %v439_v42 }
 0x2aa   :  { %v302_v44 = vpop.f32.mrb[2].mxu0 }
 0x2ab   :  { %v303_v45 = vadd.f32 %v327_v43, %v302_v44  ;;  %v400_v46 = vpop.f32.mrb[3].mxu0 }
 0x2ad   :  { %307 = vst.msk [vmem:[#allocation5] sm:$0xff] %vm306_vm3, %v303_v45 }
 0x2ae   :  { %473 = shalt.err (!%p470_p12)
}
 0x2af   :  { %s474_s30 = scalar_lea.hbm %s641_s7, 128 }
 0x2b0   :  { %p475_p13 = scmp.ne.s32.totalorder %s641_s7, %s474_s30  ;;  %p478_p0 = scmp.lt.u32.totalorder %s474_s30, %s641_s7 }
 0x2b2   :  { %p480_p1 = pnand %p478_p0, %p475_p13 }
 0x2b4   :  { %483 = shalt.err (!%p480_p1)
}
 0x2b5   :  { %317 = dma.vmem_to_hbm [thread:$0]  %s315_s27, 128, %s641_s7, [#allocation4]  }
 0x2b6   :  { %486 = dma.done.wait [#allocation4], 128  }
 0x2b7   :  { %487 = vsyncadd [#allocation4], 4294967168 }
 0x2b8   :  { %321 = vsyncpa [#allocation3], 1 }
 0x2b9   :  { %322 = vsyncpa [#allocation4], 1 }

</bundles_post_ra>
